<compile_context>
chip_gen: v7x
topology: tpu7x:2x2x1
jax: 0.10.0
libtpu: 0.0.40
codegen_flags: <defaults>
</compile_context>

<pallas_src>
import functools

import jax
import jax.numpy as jnp
from jax.experimental import pallas as pl
from jax.experimental.pallas import tpu as pltpu

EPS = 1e-5       # PyTorch BatchNorm2d default eps
SMALL_HW = 512   # at/below this, keep the single fused grid=(1,) kernel
TILE_CAP = 1024  # max FC tile edge (lane-dense, multiple of 128)


def _conv_bn(patches, w1, b1, g1, be1, w2, b2, g2, be2):
    """conv1 (3x3 via im2col matmul) + ReLU + BN1, conv2 (1x1) + ReLU + BN2."""
    y1 = jnp.dot(w1, patches, preferred_element_type=jnp.float32)   # (64, HW)
    y1 = jnp.maximum(y1 + b1, 0.0)
    m1 = jnp.mean(y1, axis=1, keepdims=True)
    v1 = jnp.mean((y1 - m1) ** 2, axis=1, keepdims=True)            # biased var
    y1 = (y1 - m1) * jax.lax.rsqrt(v1 + EPS) * g1 + be1

    y2 = jnp.dot(w2, y1, preferred_element_type=jnp.float32)        # (1, HW)
    y2 = jnp.maximum(y2 + b2, 0.0)
    m2 = jnp.mean(y2, axis=1, keepdims=True)
    v2 = jnp.mean((y2 - m2) ** 2, axis=1, keepdims=True)
    return (y2 - m2) * jax.lax.rsqrt(v2 + EPS) * g2 + be2


def fused_kernel(patches_ref, w1_ref, b1_ref, g1_ref, be1_ref,
                 w2_ref, b2_ref, g2_ref, be2_ref, wfct_ref, bfc_ref, out_ref):
    """Whole network in one grid step -- used only for small HW."""
    y2 = _conv_bn(patches_ref[...], w1_ref[...], b1_ref[...], g1_ref[...],
                  be1_ref[...], w2_ref[...], b2_ref[...], g2_ref[...],
                  be2_ref[...])
    o = jnp.dot(y2.astype(jnp.bfloat16), wfct_ref[...],
                preferred_element_type=jnp.float32) + bfc_ref[...]
    out_ref[...] = jnp.where(o > 0, o, 0.01 * o)


def conv_bn_kernel(patches_ref, w1_ref, b1_ref, g1_ref, be1_ref,
                   w2_ref, b2_ref, g2_ref, be2_ref, y2_ref):
    """Preamble: conv/BN stack run exactly once; bf16 output feeds the FC."""
    y2 = _conv_bn(patches_ref[...], w1_ref[...], b1_ref[...], g1_ref[...],
                  be1_ref[...], w2_ref[...], b2_ref[...], g2_ref[...],
                  be2_ref[...])
    y2_ref[...] = y2.astype(jnp.bfloat16)


def fc_tiled_kernel(y2_ref, w_ref, bfc_ref, out_ref, acc_ref):
    """out[0, n] = LeakyReLU( sum_k  y2[0, k-tile] @ W^T[k-tile, n-tile] + b[n] )."""
    k = pl.program_id(1)

    @pl.when(k == 0)
    def _init():
        acc_ref[...] = jnp.zeros_like(acc_ref)

    acc_ref[...] += jnp.dot(y2_ref[...], w_ref[...],
                            preferred_element_type=jnp.float32)

    @pl.when(k == pl.num_programs(1) - 1)
    def _finalize():
        o = acc_ref[...] + bfc_ref[...]
        out_ref[...] = jnp.where(o > 0, o, 0.01 * o)


def _pick_tile(hw, cap=TILE_CAP):
    """Largest multiple of 128 that divides hw and is <= cap (lane-dense tiles)."""
    t = min(cap, hw)
    t -= t % 128
    while t >= 128:
        if hw % t == 0:
            return t
        t -= 128
    return None


def init_params(key, dimz, dimy, dimx):
    hw = dimz * dimy * dimx
    ks = jax.random.split(key, 6)
    w1 = jax.random.normal(ks[0], (64, 1, 3, 3), jnp.float32) * 0.1
    b1 = jax.random.normal(ks[1], (64,), jnp.float32) * 0.1
    w2 = jax.random.normal(ks[2], (1, 64, 1, 1), jnp.float32) * 0.1
    b2 = jax.random.normal(ks[3], (1,), jnp.float32) * 0.1
    wfc = jax.random.normal(ks[4], (hw, hw), jnp.float32) * 0.05   # (out, in)
    bfc = jax.random.normal(ks[5], (hw,), jnp.float32) * 0.05
    return dict(
        w1=w1.reshape(64, 9), b1=b1.reshape(64, 1),
        g1=jnp.ones((64, 1), jnp.float32), be1=jnp.zeros((64, 1), jnp.float32),
        w2=w2.reshape(1, 64), b2=b2.reshape(1, 1),
        g2=jnp.ones((1, 1), jnp.float32), be2=jnp.zeros((1, 1), jnp.float32),
        # FC weight stored transposed and in bf16 (dominant HBM read -> 2x fewer bytes).
        wfc_t=wfc.T.astype(jnp.bfloat16), bfc=bfc.reshape(1, hw),
    )


@functools.partial(jax.jit, static_argnames=("dimz", "dimy", "dimx"))
def nn_forward(x2d, params, *, dimz, dimy, dimx):
    """x2d: (dimy, dimx) float32 image (dimz == 1 for the conv path)."""
    H, W = dimy, dimx
    hw = dimz * dimy * dimx

    # im2col glue: patches[3*dy+dx, h*W+w] = x_pad[h+dy, w+dx]   (tiny, plain JAX)
    xp = jnp.pad(x2d.astype(jnp.float32), ((1, 1), (1, 1)))
    patches = jnp.stack(
        [xp[dy:dy + H, dx:dx + W].reshape(H * W)
         for dy in range(3) for dx in range(3)], axis=0)              # (9, HW)

    conv_args = (patches, params["w1"], params["b1"], params["g1"], params["be1"],
                 params["w2"], params["b2"], params["g2"], params["be2"])

    tn = _pick_tile(hw)
    tk = tn
    # TODO(synk): pad hw up to a multiple of 128 so ragged sizes can also take the
    # tiled/pipelined FC path instead of falling back to the single-block kernel.
    if hw <= SMALL_HW or tn is None:
        args = conv_args + (params["wfc_t"], params["bfc"])
        out = pl.pallas_call(
            fused_kernel,
            out_shape=jax.ShapeDtypeStruct((1, hw), jnp.float32),
            grid=(1,),
            in_specs=[pl.BlockSpec(a.shape, lambda i: (0, 0)) for a in args],
            out_specs=pl.BlockSpec((1, hw), lambda i: (0, 0)),
        )(*args)
        return out.reshape(dimz, dimy, dimx)

    # --- stage 1: conv/BN preamble, run exactly once (hoisted out of FC grid) ---
    y2 = pl.pallas_call(
        conv_bn_kernel,
        out_shape=jax.ShapeDtypeStruct((1, hw), jnp.bfloat16),
        grid=(1,),
        in_specs=[pl.BlockSpec(a.shape, lambda i: (0, 0)) for a in conv_args],
        out_specs=pl.BlockSpec((1, hw), lambda i: (0, 0)),
    )(*conv_args)

    # --- stage 2: tiled, double-buffered FC streaming the (HW, HW) bf16 weight ---
    out = pl.pallas_call(
        fc_tiled_kernel,
        out_shape=jax.ShapeDtypeStruct((1, hw), jnp.float32),
        grid_spec=pltpu.PrefetchScalarGridSpec(
            num_scalar_prefetch=0,
            grid=(hw // tn, hw // tk),               # (N tiles, K tiles); K innermost
            in_specs=[
                pl.BlockSpec((1, tk), lambda n, k: (0, k)),      # y2 K-slice (bf16)
                pl.BlockSpec((tk, tn), lambda n, k: (k, n)),     # weight tile (bf16)
                pl.BlockSpec((1, tn), lambda n, k: (0, n)),      # bias N-slice
            ],
            out_specs=pl.BlockSpec((1, tn), lambda n, k: (0, n)),
            scratch_shapes=[pltpu.VMEM((1, tn), jnp.float32)],   # f32 accumulator
        ),
        compiler_params=pltpu.CompilerParams(
            dimension_semantics=("parallel", "arbitrary")),      # megacore N, reduce K
    )(y2, params["wfc_t"], params["bfc"])
    return out.reshape(dimz, dimy, dimx)


def ref_forward(x2d, params, dimz, dimy, dimx):
    """Plain-JAX reference mirroring the PyTorch module (same bf16 FC weights)."""
    hw = dimz * dimy * dimx
    hp = jax.lax.Precision.HIGHEST
    xn = x2d[None, None].astype(jnp.float32)                       # (1,1,H,W)
    w1 = params["w1"].reshape(64, 1, 3, 3)
    y = jax.lax.conv_general_dilated(
        xn, w1, (1, 1), ((1, 1), (1, 1)),
        dimension_numbers=("NCHW", "OIHW", "NCHW"), precision=hp)
    y = jnp.maximum(y + params["b1"].reshape(1, 64, 1, 1), 0.0)
    m = y.mean(axis=(0, 2, 3), keepdims=True)
    v = ((y - m) ** 2).mean(axis=(0, 2, 3), keepdims=True)
    y = (y - m) / jnp.sqrt(v + EPS)                                 # gamma=1, beta=0
    w2 = params["w2"].reshape(1, 64, 1, 1)
    y = jax.lax.conv_general_dilated(
        y, w2, (1, 1), ((0, 0), (0, 0)),
        dimension_numbers=("NCHW", "OIHW", "NCHW"), precision=hp)
    y = jnp.maximum(y + params["b2"].reshape(1, 1, 1, 1), 0.0)
    m = y.mean()
    v = ((y - m) ** 2).mean()
    y = (y - m) / jnp.sqrt(v + EPS)
    flat = y.reshape(1, hw).astype(jnp.bfloat16)
    o = jnp.dot(flat, params["wfc_t"], preferred_element_type=jnp.float32)
    o = o + params["bfc"]
    o = jnp.where(o > 0, o, 0.01 * o)
    return o.reshape(dimz, dimy, dimx)


if __name__ == "__main__":
    key = jax.random.PRNGKey(0)
    for (dimz, dimy, dimx) in ((1, 16, 16),     # small: fused grid=(1,) path
                               (1, 32, 64)):    # larger: tiled/pipelined FC path
        kx, kp = jax.random.split(jax.random.fold_in(key, dimy * dimx))
        x = jax.random.normal(kx, (dimy, dimx), jnp.float32)
        params = init_params(kp, dimz, dimy, dimx)

        y = nn_forward(x, params, dimz=dimz, dimy=dimy, dimx=dimx)
        y = jax.block_until_ready(y)
        assert y.shape == (dimz, dimy, dimx) and y.dtype == jnp.float32

        y_ref = ref_forward(x, params, dimz, dimy, dimx)
        assert jnp.allclose(y, y_ref, rtol=2e-3, atol=2e-3), (
            f"mismatch vs JAX reference at grid {(dimz, dimy, dimx)}")

    print("KERNEL_OK")
</pallas_src>

<mosaic_0001>
module attributes {stable_mosaic.version = 11 : i64} {
  func.func @fused_kernel(%arg0: i32, %arg1: memref<9x256xf32, #tpu.memory_space<vmem>>, %arg2: memref<64x9xf32, #tpu.memory_space<vmem>>, %arg3: memref<64x1xf32, #tpu.memory_space<vmem>>, %arg4: memref<64x1xf32, #tpu.memory_space<vmem>>, %arg5: memref<64x1xf32, #tpu.memory_space<vmem>>, %arg6: memref<1x64xf32, #tpu.memory_space<vmem>>, %arg7: memref<1x1xf32, #tpu.memory_space<vmem>>, %arg8: memref<1x1xf32, #tpu.memory_space<vmem>>, %arg9: memref<1x1xf32, #tpu.memory_space<vmem>>, %arg10: memref<256x256xbf16, #tpu.memory_space<vmem>>, %arg11: memref<1x256xf32, #tpu.memory_space<vmem>>, %arg12: memref<1x256xf32, #tpu.memory_space<vmem>>) attributes {dimension_semantics = [#tpu.dimension_semantics<arbitrary>], iteration_bounds = array<i64: 1>, scalar_prefetch = 0 : i64, scratch_operands = 0 : i64, tpu.core_type = #tpu.core_type<tc>, window_params = [{pipeline_mode = #tpu.pipeline_mode<synchronous>, transform_indices = @transform_0, window_bounds = array<i64: 9, 256>}, {pipeline_mode = #tpu.pipeline_mode<synchronous>, transform_indices = @transform_1, window_bounds = array<i64: 64, 9>}, {pipeline_mode = #tpu.pipeline_mode<synchronous>, transform_indices = @transform_2, window_bounds = array<i64: 64, 1>}, {pipeline_mode = #tpu.pipeline_mode<synchronous>, transform_indices = @transform_3, window_bounds = array<i64: 64, 1>}, {pipeline_mode = #tpu.pipeline_mode<synchronous>, transform_indices = @transform_4, window_bounds = array<i64: 64, 1>}, {pipeline_mode = #tpu.pipeline_mode<synchronous>, transform_indices = @transform_5, window_bounds = array<i64: 1, 64>}, {pipeline_mode = #tpu.pipeline_mode<synchronous>, transform_indices = @transform_6, window_bounds = array<i64: 1, 1>}, {pipeline_mode = #tpu.pipeline_mode<synchronous>, transform_indices = @transform_7, window_bounds = array<i64: 1, 1>}, {pipeline_mode = #tpu.pipeline_mode<synchronous>, transform_indices = @transform_8, window_bounds = array<i64: 1, 1>}, {pipeline_mode = #tpu.pipeline_mode<synchronous>, transform_indices = @transform_9, window_bounds = array<i64: 256, 256>}, {pipeline_mode = #tpu.pipeline_mode<synchronous>, transform_indices = @transform_10, window_bounds = array<i64: 1, 256>}, {pipeline_mode = #tpu.pipeline_mode<synchronous>, transform_indices = @transform_11, window_bounds = array<i64: 1, 256>}]} {
    %c0 = arith.constant 0 : index
    %c0_0 = arith.constant 0 : index
    %0 = vector.load %arg1[%c0, %c0_0] : memref<9x256xf32, #tpu.memory_space<vmem>>, vector<9x256xf32>
    %c0_1 = arith.constant 0 : index
    %c0_2 = arith.constant 0 : index
    %1 = vector.load %arg2[%c0_1, %c0_2] : memref<64x9xf32, #tpu.memory_space<vmem>>, vector<64x9xf32>
    %c0_3 = arith.constant 0 : index
    %c0_4 = arith.constant 0 : index
    %2 = vector.load %arg3[%c0_3, %c0_4] : memref<64x1xf32, #tpu.memory_space<vmem>>, vector<64x1xf32>
    %c0_5 = arith.constant 0 : index
    %c0_6 = arith.constant 0 : index
    %3 = vector.load %arg4[%c0_5, %c0_6] : memref<64x1xf32, #tpu.memory_space<vmem>>, vector<64x1xf32>
    %c0_7 = arith.constant 0 : index
    %c0_8 = arith.constant 0 : index
    %4 = vector.load %arg5[%c0_7, %c0_8] : memref<64x1xf32, #tpu.memory_space<vmem>>, vector<64x1xf32>
    %c0_9 = arith.constant 0 : index
    %c0_10 = arith.constant 0 : index
    %5 = vector.load %arg6[%c0_9, %c0_10] : memref<1x64xf32, #tpu.memory_space<vmem>>, vector<1x64xf32>
    %c0_11 = arith.constant 0 : index
    %c0_12 = arith.constant 0 : index
    %6 = vector.load %arg7[%c0_11, %c0_12] : memref<1x1xf32, #tpu.memory_space<vmem>>, vector<1x1xf32>
    %c0_13 = arith.constant 0 : index
    %c0_14 = arith.constant 0 : index
    %7 = vector.load %arg8[%c0_13, %c0_14] : memref<1x1xf32, #tpu.memory_space<vmem>>, vector<1x1xf32>
    %c0_15 = arith.constant 0 : index
    %c0_16 = arith.constant 0 : index
    %8 = vector.load %arg9[%c0_15, %c0_16] : memref<1x1xf32, #tpu.memory_space<vmem>>, vector<1x1xf32>
    %cst = arith.constant dense<0.000000e+00> : vector<64x256xf32>
    %9 = tpu.matmul %1, %0, %cst {dimension_numbers = #tpu.dot_dimension_numbers<[1], [0], [0], [1], [0, 0, 1, 1], [], []>} : vector<64x9xf32>, vector<9x256xf32>, vector<64x256xf32> -> vector<64x256xf32>
    %10 = vector.broadcast %2 : vector<64x1xf32> to vector<64x256xf32>
    %11 = arith.addf %9, %10 : vector<64x256xf32>
    %cst_17 = arith.constant 0.000000e+00 : f32
    %12 = vector.broadcast %cst_17 : f32 to vector<64x256xf32>
    %13 = arith.maximumf %11, %12 : vector<64x256xf32>
    %cst_18 = arith.constant dense<0.000000e+00> : vector<64xf32>
    %14 = vector.multi_reduction <add>, %13, %cst_18 [1] : vector<64x256xf32> to vector<64xf32>
    %15 = vector.shape_cast %14 : vector<64xf32> to vector<64x1xf32>
    %cst_19 = arith.constant 2.560000e+02 : f32
    %16 = vector.broadcast %cst_19 : f32 to vector<64x1xf32>
    %17 = arith.divf %15, %16 : vector<64x1xf32>
    %18 = vector.broadcast %17 : vector<64x1xf32> to vector<64x256xf32>
    %19 = arith.subf %13, %18 : vector<64x256xf32>
    %20 = arith.mulf %19, %19 : vector<64x256xf32>
    %cst_20 = arith.constant dense<0.000000e+00> : vector<64xf32>
    %21 = vector.multi_reduction <add>, %20, %cst_20 [1] : vector<64x256xf32> to vector<64xf32>
    %22 = vector.shape_cast %21 : vector<64xf32> to vector<64x1xf32>
    %cst_21 = arith.constant 2.560000e+02 : f32
    %23 = vector.broadcast %cst_21 : f32 to vector<64x1xf32>
    %24 = arith.divf %22, %23 : vector<64x1xf32>
    %25 = vector.broadcast %17 : vector<64x1xf32> to vector<64x256xf32>
    %26 = arith.subf %13, %25 : vector<64x256xf32>
    %cst_22 = arith.constant 9.99999974E-6 : f32
    %27 = vector.broadcast %cst_22 : f32 to vector<64x1xf32>
    %28 = arith.addf %24, %27 : vector<64x1xf32>
    %29 = math.rsqrt %28 : vector<64x1xf32>
    %30 = vector.broadcast %29 : vector<64x1xf32> to vector<64x256xf32>
    %31 = arith.mulf %26, %30 : vector<64x256xf32>
    %32 = vector.broadcast %3 : vector<64x1xf32> to vector<64x256xf32>
    %33 = arith.mulf %31, %32 : vector<64x256xf32>
    %34 = vector.broadcast %4 : vector<64x1xf32> to vector<64x256xf32>
    %35 = arith.addf %33, %34 : vector<64x256xf32>
    %cst_23 = arith.constant dense<0.000000e+00> : vector<1x256xf32>
    %36 = tpu.matmul %5, %35, %cst_23 {dimension_numbers = #tpu.dot_dimension_numbers<[1], [0], [0], [1], [0, 0, 1, 1], [], []>} : vector<1x64xf32>, vector<64x256xf32>, vector<1x256xf32> -> vector<1x256xf32>
    %37 = vector.broadcast %6 : vector<1x1xf32> to vector<1x256xf32>
    %38 = arith.addf %36, %37 : vector<1x256xf32>
    %cst_24 = arith.constant 0.000000e+00 : f32
    %39 = vector.broadcast %cst_24 : f32 to vector<1x256xf32>
    %40 = arith.maximumf %38, %39 : vector<1x256xf32>
    %cst_25 = arith.constant dense<0.000000e+00> : vector<1xf32>
    %41 = vector.multi_reduction <add>, %40, %cst_25 [1] : vector<1x256xf32> to vector<1xf32>
    %42 = vector.shape_cast %41 : vector<1xf32> to vector<1x1xf32>
    %cst_26 = arith.constant 2.560000e+02 : f32
    %43 = vector.broadcast %cst_26 : f32 to vector<1x1xf32>
    %44 = arith.divf %42, %43 : vector<1x1xf32>
    %45 = vector.broadcast %44 : vector<1x1xf32> to vector<1x256xf32>
    %46 = arith.subf %40, %45 : vector<1x256xf32>
    %47 = arith.mulf %46, %46 : vector<1x256xf32>
    %cst_27 = arith.constant dense<0.000000e+00> : vector<1xf32>
    %48 = vector.multi_reduction <add>, %47, %cst_27 [1] : vector<1x256xf32> to vector<1xf32>
    %49 = vector.shape_cast %48 : vector<1xf32> to vector<1x1xf32>
    %cst_28 = arith.constant 2.560000e+02 : f32
    %50 = vector.broadcast %cst_28 : f32 to vector<1x1xf32>
    %51 = arith.divf %49, %50 : vector<1x1xf32>
    %52 = vector.broadcast %44 : vector<1x1xf32> to vector<1x256xf32>
    %53 = arith.subf %40, %52 : vector<1x256xf32>
    %cst_29 = arith.constant 9.99999974E-6 : f32
    %54 = vector.broadcast %cst_29 : f32 to vector<1x1xf32>
    %55 = arith.addf %51, %54 : vector<1x1xf32>
    %56 = math.rsqrt %55 : vector<1x1xf32>
    %57 = vector.broadcast %56 : vector<1x1xf32> to vector<1x256xf32>
    %58 = arith.mulf %53, %57 : vector<1x256xf32>
    %59 = vector.broadcast %7 : vector<1x1xf32> to vector<1x256xf32>
    %60 = arith.mulf %58, %59 : vector<1x256xf32>
    %61 = vector.broadcast %8 : vector<1x1xf32> to vector<1x256xf32>
    %62 = arith.addf %60, %61 : vector<1x256xf32>
    %63 = arith.truncf %62 : vector<1x256xf32> to vector<1x256xbf16>
    %c0_30 = arith.constant 0 : index
    %c0_31 = arith.constant 0 : index
    %64 = vector.load %arg10[%c0_30, %c0_31] : memref<256x256xbf16, #tpu.memory_space<vmem>>, vector<256x256xbf16>
    %cst_32 = arith.constant dense<0.000000e+00> : vector<1x256xf32>
    %65 = tpu.matmul %63, %64, %cst_32 {dimension_numbers = #tpu.dot_dimension_numbers<[1], [0], [0], [1], [0, 0, 1, 1], [], []>} : vector<1x256xbf16>, vector<256x256xbf16>, vector<1x256xf32> -> vector<1x256xf32>
    %c0_33 = arith.constant 0 : index
    %c0_34 = arith.constant 0 : index
    %66 = vector.load %arg11[%c0_33, %c0_34] : memref<1x256xf32, #tpu.memory_space<vmem>>, vector<1x256xf32>
    %67 = arith.addf %65, %66 : vector<1x256xf32>
    %cst_35 = arith.constant 0.000000e+00 : f32
    %68 = vector.broadcast %cst_35 : f32 to vector<1x256xf32>
    %69 = arith.cmpf ogt, %67, %68 : vector<1x256xf32>
    %cst_36 = arith.constant 0.00999999977 : f32
    %70 = vector.broadcast %cst_36 : f32 to vector<1x256xf32>
    %71 = arith.mulf %70, %67 : vector<1x256xf32>
    %72 = arith.select %69, %67, %71 : vector<1x256xi1>, vector<1x256xf32>
    %c0_37 = arith.constant 0 : index
    %c0_38 = arith.constant 0 : index
    %73 = vector.load %arg12[%c0_37, %c0_38] : memref<1x256xf32, #tpu.memory_space<vmem>>, vector<1x256xf32>
    tpu.vector_store %arg12[%c0_37, %c0_38], %72 {strides = array<i32>} : memref<1x256xf32, #tpu.memory_space<vmem>>, vector<1x256xf32>,
    return
  }
  func.func @transform_0(%arg0: i32) -> (i32, i32) {
    %c0_i32 = arith.constant 0 : i32
    %c0_i32_0 = arith.constant 0 : i32
    %c0_i32_1 = arith.constant 0 : i32
    return %c0_i32, %c0_i32_0 : i32, i32
  }
  func.func @transform_1(%arg0: i32) -> (i32, i32) {
    %c0_i32 = arith.constant 0 : i32
    %c0_i32_0 = arith.constant 0 : i32
    %c0_i32_1 = arith.constant 0 : i32
    return %c0_i32, %c0_i32_0 : i32, i32
  }
  func.func @transform_2(%arg0: i32) -> (i32, i32) {
    %c0_i32 = arith.constant 0 : i32
    %c0_i32_0 = arith.constant 0 : i32
    %c0_i32_1 = arith.constant 0 : i32
    return %c0_i32, %c0_i32_0 : i32, i32
  }
  func.func @transform_3(%arg0: i32) -> (i32, i32) {
    %c0_i32 = arith.constant 0 : i32
    %c0_i32_0 = arith.constant 0 : i32
    %c0_i32_1 = arith.constant 0 : i32
    return %c0_i32, %c0_i32_0 : i32, i32
  }
  func.func @transform_4(%arg0: i32) -> (i32, i32) {
    %c0_i32 = arith.constant 0 : i32
    %c0_i32_0 = arith.constant 0 : i32
    %c0_i32_1 = arith.constant 0 : i32
    return %c0_i32, %c0_i32_0 : i32, i32
  }
  func.func @transform_5(%arg0: i32) -> (i32, i32) {
    %c0_i32 = arith.constant 0 : i32
    %c0_i32_0 = arith.constant 0 : i32
    %c0_i32_1 = arith.constant 0 : i32
    return %c0_i32, %c0_i32_0 : i32, i32
  }
  func.func @transform_6(%arg0: i32) -> (i32, i32) {
    %c0_i32 = arith.constant 0 : i32
    %c0_i32_0 = arith.constant 0 : i32
    %c0_i32_1 = arith.constant 0 : i32
    return %c0_i32, %c0_i32_0 : i32, i32
  }
  func.func @transform_7(%arg0: i32) -> (i32, i32) {
    %c0_i32 = arith.constant 0 : i32
    %c0_i32_0 = arith.constant 0 : i32
    %c0_i32_1 = arith.constant 0 : i32
    return %c0_i32, %c0_i32_0 : i32, i32
  }
  func.func @transform_8(%arg0: i32) -> (i32, i32) {
    %c0_i32 = arith.constant 0 : i32
    %c0_i32_0 = arith.constant 0 : i32
    %c0_i32_1 = arith.constant 0 : i32
    return %c0_i32, %c0_i32_0 : i32, i32
  }
  func.func @transform_9(%arg0: i32) -> (i32, i32) {
    %c0_i32 = arith.constant 0 : i32
    %c0_i32_0 = arith.constant 0 : i32
    %c0_i32_1 = arith.constant 0 : i32
    return %c0_i32, %c0_i32_0 : i32, i32
  }
  func.func @transform_10(%arg0: i32) -> (i32, i32) {
    %c0_i32 = arith.constant 0 : i32
    %c0_i32_0 = arith.constant 0 : i32
    %c0_i32_1 = arith.constant 0 : i32
    return %c0_i32, %c0_i32_0 : i32, i32
  }
  func.func @transform_11(%arg0: i32) -> (i32, i32) {
    %c0_i32 = arith.constant 0 : i32
    %c0_i32_0 = arith.constant 0 : i32
    %c0_i32_1 = arith.constant 0 : i32
    return %c0_i32, %c0_i32_0 : i32, i32
  }
}

</mosaic_0001>

<bundles_post_ra>
// kernel: nn_forward.1
= control target key start
LH: loop header
LB: loop body
LE: loop exit
PB: predicated region body
PF: predicated region fallthrough
CT: control target
= control target key end

     0   :  { %vm149_vm0 = vcmask 1040384   ;;  %vm1071_vm1 = vmmov 1   ;;  %v1072_v2 = vmov 0.0   ;;  %v1073_v6 = vmov 0   ;;  %s1640_s0 = inlined_call_operand.vmem [shape: f32[9,256], index: 0, kind: input, shape index: {}]   ;;  %s1641_s1 = inlined_call_operand.vmem [shape: f32[64,9], index: 1, kind: input, shape index: {}]   ;;  %s1642_s2 = inlined_call_operand.vmem [shape: f32[64,1], index: 2, kind: input, shape index: {}]   ;;  %s1643_s3 = inlined_call_operand.vmem [shape: f32[64,1], index: 3, kind: input, shape index: {}]   ;;  %s1644_s4 = inlined_call_operand.vmem [shape: f32[64,1], index: 4, kind: input, shape index: {}]   ;;  %s1645_s6 = inlined_call_operand.<no memory space> [shape: f32[1,1], index: 6, kind: input, shape index: {}]   ;;  %s1646_s5 = inlined_call_operand.vmem [shape: f32[1,64], index: 5, kind: input, shape index: {}]   ;;  %s1647_s8 = inlined_call_operand.<no memory space> [shape: f32[1,1], index: 8, kind: input, shape index: {}]   ;;  %s1648_s7 = inlined_call_operand.<no memory space> [shape: f32[1,1], index: 7, kind: input, shape index: {}]   ;;  %s1649_s9 = inlined_call_operand.vmem [shape: bf16[256,256], index: 9, kind: input, shape index: {}]   ;;  %s1650_s10 = inlined_call_operand.vmem [shape: f32[1,256], index: 10, kind: input, shape index: {}]   ;;  %s1651_s11 = inlined_call_operand.vmem [shape: f32[1,256], index: 11, kind: output, shape index: {}]  }
   0x1   :  { %v45_v0 = vld [vmem:[%s1640_s0 + $0x8] sm:$0xff]  ;;  %v47_v1 = vld [vmem:[%s1640_s0 + $0x18] sm:$0x1]  ;;  %vm978_vm2 = vmpackc.low %vm149_vm0, %vm1071_vm1  ;;  %220 = vmatprep.mubr.f32.mxu1 %v1072_v2  ;;  %1004 = vset.pattern.permute.xlu1 %v1073_v6  ;;  %vm124_vm3 = vcmask 72704   ;;  %vm535_vm4 = vcmask 523264  }
   0x2   :  { %v977_v3 = vpack.c.bf16 %v47_v1, %v45_v0  ;;  %v44_v4 = vld [vmem:[%s1640_s0] sm:$0xff]  ;;  %v46_v5 = vld [vmem:[%s1640_s0 + $0x10] sm:$0x1]  ;;  %1003 = vset.pattern.permute.xlu0 %v1073_v6  ;;  %v59_v11 = vld [vmem:[%s1642_s2 + $0x18] sm:$0xff] }
   0x3   :  { %v980_v7 = vpack.c.bf16 %v46_v5, %v44_v4  ;;  %v48_v8 = vld [vmem:[%s1641_s1] sm:$0xff]  ;;  %v58_v9 = vld [vmem:[%s1642_s2 + $0x10] sm:$0xff]  ;;  %v57_v12 = vld [vmem:[%s1642_s2 + $0x8] sm:$0xff] }
   0x4   :  { %979 = vmatprep.subr.msk.bf16.mxu1 %vm978_vm2, %v977_v3  ;;  %v56_v10 = vld [vmem:[%s1642_s2] sm:$0xff]  ;;  %96 = vperm.xlu1 %1004, %v58_v9   ;;  %v49_v13 = vld [vmem:[%s1641_s1 + $0x8] sm:$0xff]  ;;  %v50_v16 = vld [vmem:[%s1641_s1 + $0x10] sm:$0xff] }
   0x5   :  { %982 = vmatpush1.bf16.msk.msra.mxu1 %vm978_vm2, %v980_v7  ;;  %86 = vperm.xlu0 %1003, %v56_v10   ;;  %v61_v14 = vld [vmem:[%s1642_s2 + $0x28] sm:$0xff]  ;;  %v60_v15 = vld [vmem:[%s1642_s2 + $0x20] sm:$0xff]  ;;  %v63_v17 = vld [vmem:[%s1642_s2 + $0x38] sm:$0xff] }
   0x6   :  { %v62_v18 = vld [vmem:[%s1642_s2 + $0x30] sm:$0xff]  ;;  %v51_v19 = vld [vmem:[%s1641_s1 + $0x18] sm:$0xff]  ;;  %v64_v20 = vld [vmem:[%s1643_s3] sm:$0xff] }
   0x7   :  { %v65_v21 = vld [vmem:[%s1643_s3 + $0x8] sm:$0xff]  ;;  %v52_v22 = vld [vmem:[%s1641_s1 + $0x20] sm:$0xff]  ;;  %v66_v24 = vld [vmem:[%s1643_s3 + $0x10] sm:$0xff] }
   0x8   :  { %936 = vmatmul.mubr.msk.f32.vlgmr.msra.gmra.mrb[0].mxu1 %vm124_vm3, %v48_v8  ;;  %101 = vperm.xlu1 %1004, %v59_v11   ;;  %v72_v23 = vld [vmem:[%s1644_s4] sm:$0xff]  ;;  %v53_v25 = vld [vmem:[%s1641_s1 + $0x28] sm:$0xff]  ;;  %v54_v27 = vld [vmem:[%s1641_s1 + $0x30] sm:$0xff] }
   0x9   :  { %226 = vmatprep.mubr.f32.mxu1 %v1072_v2  ;;  %91 = vperm.xlu0 %1003, %v57_v12   ;;  %v73_v26 = vld [vmem:[%s1644_s4 + $0x8] sm:$0xff]  ;;  %v67_v28 = vld [vmem:[%s1643_s3 + $0x18] sm:$0xff] }
   0xa   :  { %v55_v29 = vld [vmem:[%s1641_s1 + $0x38] sm:$0xff] }
   0xc   :  { %937 = vmatmul.mubr.msk.f32.gmra.mrb[2].mxu1 %vm124_vm3, %v49_v13  ;;  %111 = vperm.xlu1 %1004, %v61_v14  }
   0xd   :  { %232 = vmatprep.mubr.f32.mxu1 %v1072_v2  ;;  %106 = vperm.xlu0 %1003, %v60_v15  }
  0x10   :  { %938 = vmatmul.mubr.msk.f32.gmra.mrb[4].mxu1 %vm124_vm3, %v50_v16  ;;  %121 = vperm.xlu1 %1004, %v63_v17  }
  0x11   :  { %238 = vmatprep.mubr.f32.mxu1 %v1072_v2  ;;  %116 = vperm.xlu0 %1003, %v62_v18  }
  0x14   :  { %939 = vmatmul.mubr.msk.f32.gmra.mrb[6].mxu1 %vm124_vm3, %v51_v19  ;;  %416 = vperm.xlu1 %1004, %v64_v20  }
  0x15   :  { %244 = vmatprep.mubr.f32.mxu1 %v1072_v2  ;;  %421 = vperm.xlu0 %1003, %v65_v21  }
  0x18   :  { %940 = vmatmul.mubr.msk.f32.gmra.mrb[8].mxu1 %vm124_vm3, %v52_v22  ;;  %472 = vperm.xlu1 %1004, %v72_v23  }
  0x19   :  { %250 = vmatprep.mubr.f32.mxu1 %v1072_v2  ;;  %426 = vperm.xlu0 %1003, %v66_v24  }
  0x1c   :  { %941 = vmatmul.mubr.msk.f32.gmra.mrb[10].mxu1 %vm124_vm3, %v53_v25  ;;  %477 = vperm.xlu1 %1004, %v73_v26  }
  0x1d   :  { %256 = vmatprep.mubr.f32.mxu1 %v1072_v2 }
  0x20   :  { %942 = vmatmul.mubr.msk.f32.gmra.mrb[12].mxu1 %vm124_vm3, %v54_v27  ;;  %431 = vperm.xlu1 %1004, %v67_v28  }
  0x21   :  { %262 = vmatprep.mubr.f32.mxu1 %v1072_v2 }
  0x24   :  { %943 = vmatmul.mubr.msk.f32.gmra.mrb[14].mxu1 %vm124_vm3, %v55_v29 }
  0x25   :  { %603 = vmatprep.mubr.f32.mxu1 %v1072_v2 }
  0x83   :  { %v97_v41 = vpop.permute.xlu1 %96 }
  0x84   :  { %v87_v30 = vpop.permute.xlu0 %86 }
  0x87   :  { %v102_v52 = vpop.permute.xlu1 %101 }
  0x88   :  { %v92_v36 = vpop.permute.xlu0 %91 }
  0x8b   :  { %v112_v4 = vpop.permute.xlu1 %111 }
  0x8c   :  { %v107_v60 = vpop.permute.xlu0 %106 }
  0x8f   :  { %v122_v20 = vpop.permute.xlu1 %121 }
  0x90   :  { %v117_v12 = vpop.permute.xlu0 %116 }
  0xdb   :  { %v222_v31 = vpop.f32.mrb[0].mxu1 }
  0xdc   :  { %v1231_v32 = vadd.f32 %v222_v31, %v87_v30  ;;  %v224_v33 = vpop.f32.mrb[1].mxu1  ;;  %v69_v31 = vld [vmem:[%s1643_s3 + $0x28] sm:$0xff] }
  0xdd   :  { %v1233_v34 = vadd.f32 %v224_v33, %v87_v30  ;;  %v75_v30 = vld [vmem:[%s1644_s4 + $0x18] sm:$0xff]  ;;  %v77_v33 = vld [vmem:[%s1644_s4 + $0x28] sm:$0xff] }
  0xde   :  { %v269_v35 = vmax.f32 %v1231_v32, 0.0 }
  0xdf   :  { %v270_v37 = vmax.f32 %v1233_v34, 0.0  ;;  %v228_v38 = vpop.f32.mrb[2].mxu1 }
  0xe0   :  { %v1237_v39 = vadd.f32 %v228_v38, %v92_v36  ;;  %v230_v40 = vpop.f32.mrb[3].mxu1  ;;  %v71_v38 = vld [vmem:[%s1643_s3 + $0x38] sm:$0xff] }
  0xe1   :  { %v1239_v42 = vadd.f32 %v230_v40, %v92_v36  ;;  %v285_v43 = vadd.f32 %v270_v37, %v269_v35  ;;  %v74_v36 = vld [vmem:[%s1644_s4 + $0x10] sm:$0xff]  ;;  %v68_v40 = vld [vmem:[%s1643_s3 + $0x20] sm:$0xff] }
  0xe2   :  { %v271_v44 = vmax.f32 %v1237_v39, 0.0 }
  0xe3   :  { %v272_v45 = vmax.f32 %v1239_v42, 0.0  ;;  %v234_v46 = vpop.f32.mrb[4].mxu1  ;;  %286 = vadd.xlane.f32.xlu0 %v285_v43  ;;  %v70_v43 = vld [vmem:[%s1643_s3 + $0x30] sm:$0xff] }
  0xe4   :  { %v1247_v47 = vadd.f32 %v234_v46, %v97_v41  ;;  %v236_v48 = vpop.f32.mrb[5].mxu1  ;;  %v16_v46 = vstv %s1645_s6 }
  0xe5   :  { %v1249_v49 = vadd.f32 %v236_v48, %v97_v41  ;;  %v288_v50 = vadd.f32 %v272_v45, %v271_v44  ;;  %v76_v41 = vld [vmem:[%s1644_s4 + $0x20] sm:$0xff]  ;;  %17 = vst [vmem:[#allocation2] sm:$0x1] %v16_v46  ;;  %v1338_v48 = vpop.permute.xlu1 %416 }
  0xe6   :  { %v273_v51 = vmax.f32 %v1247_v47, 0.0 }
  0xe7   :  { %v274_v53 = vmax.f32 %v1249_v49, 0.0  ;;  %v240_v54 = vpop.f32.mrb[6].mxu1  ;;  %289 = vadd.xlane.f32.xlu1 %v288_v50 }
  0xe8   :  { %v1257_v55 = vadd.f32 %v240_v54, %v102_v52  ;;  %v242_v56 = vpop.f32.mrb[7].mxu1 }
  0xe9   :  { %v1259_v57 = vadd.f32 %v242_v56, %v102_v52  ;;  %v291_v58 = vadd.f32 %v274_v53, %v273_v51  ;;  %v1340_v50 = vpop.permute.xlu1 %472  ;;  %v1342_v52 = vpop.permute.xlu0 %421 }
  0xea   :  { %v275_v59 = vmax.f32 %v1257_v55, 0.0 }
  0xeb   :  { %v276_v61 = vmax.f32 %v1259_v57, 0.0  ;;  %v246_v62 = vpop.f32.mrb[8].mxu1  ;;  %292 = vadd.xlane.f32.xlu0 %v291_v58 }
  0xec   :  { %v1267_v63 = vadd.f32 %v246_v62, %v107_v60  ;;  %v248_v0 = vpop.f32.mrb[9].mxu1 }
  0xed   :  { %v1269_v1 = vadd.f32 %v248_v0, %v107_v60  ;;  %v294_v2 = vadd.f32 %v276_v61, %v275_v59  ;;  %v1344_v54 = vpop.permute.xlu1 %477  ;;  %v1346_v56 = vpop.permute.xlu0 %426 }
  0xee   :  { %v277_v3 = vmax.f32 %v1267_v63, 0.0 }
  0xef   :  { %v278_v5 = vmax.f32 %v1269_v1, 0.0  ;;  %v252_v6 = vpop.f32.mrb[10].mxu1  ;;  %295 = vadd.xlane.f32.xlu0 %v294_v2 }
  0xf0   :  { %v1277_v7 = vadd.f32 %v252_v6, %v112_v4  ;;  %v254_v8 = vpop.f32.mrb[11].mxu1 }
  0xf1   :  { %v1279_v9 = vadd.f32 %v254_v8, %v112_v4  ;;  %v297_v10 = vadd.f32 %v278_v5, %v277_v3  ;;  %v1348_v58 = vpop.permute.xlu1 %431 }
  0xf2   :  { %v279_v11 = vmax.f32 %v1277_v7, 0.0 }
  0xf3   :  { %v280_v13 = vmax.f32 %v1279_v9, 0.0  ;;  %v258_v14 = vpop.f32.mrb[12].mxu1  ;;  %298 = vadd.xlane.f32.xlu1 %v297_v10 }
  0xf4   :  { %v1287_v15 = vadd.f32 %v258_v14, %v117_v12  ;;  %v260_v16 = vpop.f32.mrb[13].mxu1 }
  0xf5   :  { %v1289_v17 = vadd.f32 %v260_v16, %v117_v12  ;;  %v300_v18 = vadd.f32 %v280_v13, %v279_v11 }
  0xf6   :  { %v281_v19 = vmax.f32 %v1287_v15, 0.0 }
  0xf7   :  { %v282_v21 = vmax.f32 %v1289_v17, 0.0  ;;  %v264_v22 = vpop.f32.mrb[14].mxu1  ;;  %301 = vadd.xlane.f32.xlu0 %v300_v18 }
  0xf8   :  { %v1297_v23 = vadd.f32 %v264_v22, %v122_v20  ;;  %v266_v24 = vpop.f32.mrb[15].mxu1 }
  0xf9   :  { %v1299_v25 = vadd.f32 %v266_v24, %v122_v20  ;;  %v303_v26 = vadd.f32 %v282_v21, %v281_v19 }
  0xfa   :  { %v283_v27 = vmax.f32 %v1297_v23, 0.0  ;;  %v79_v23 = vld [vmem:[%s1644_s4 + $0x38] sm:$0xff] }
  0xfb   :  { %v284_v28 = vmax.f32 %v1299_v25, 0.0  ;;  %304 = vadd.xlane.f32.xlu1 %v303_v26  ;;  %v78_v25 = vld [vmem:[%s1644_s4 + $0x30] sm:$0xff] }
  0xfd   :  { %v306_v29 = vadd.f32 %v284_v28, %v283_v27 }
  0xff   :  { %307 = vadd.xlane.f32.xlu0 %v306_v29 }
 0x10c   :  { %487 = vperm.xlu1 %1004, %v75_v30  }
 0x110   :  { %441 = vperm.xlu1 %1004, %v69_v31  }
 0x114   :  { %497 = vperm.xlu1 %1004, %v77_v33  }
 0x115   :  { %482 = vperm.xlu0 %1003, %v74_v36  }
 0x118   :  { %451 = vperm.xlu1 %1004, %v71_v38  }
 0x119   :  { %436 = vperm.xlu0 %1003, %v68_v40  }
 0x11d   :  { %492 = vperm.xlu0 %1003, %v76_v41  }
 0x121   :  { %446 = vperm.xlu0 %1003, %v70_v43  }
 0x170   :  { %v287_v60 = vpop.xlane.xlu0 %286 }
 0x171   :  { %v310_v62 = vmul.f32 0.00390625, %v287_v60 }
 0x173   :  { %v1352_v0 = vsub.f32 %v269_v35, %v310_v62  ;;  %v1356_v2 = vsub.f32 %v270_v37, %v310_v62 }
 0x174   :  { %v290_v4 = vpop.xlane.xlu1 %289 }
 0x175   :  { %v311_v6 = vmul.f32 0.00390625, %v290_v4  ;;  %v334_v8 = vmul.f32 %v1352_v0, %v1352_v0  ;;  %v335_v10 = vmul.f32 %v1356_v2, %v1356_v2 }
 0x177   :  { %v1364_v12 = vsub.f32 %v271_v44, %v311_v6  ;;  %v1368_v32 = vsub.f32 %v272_v45, %v311_v6  ;;  %v350_v35 = vadd.f32 %v335_v10, %v334_v8 }
 0x178   :  { %v293_v34 = vpop.xlane.xlu0 %292 }
 0x179   :  { %v312_v37 = vmul.f32 0.00390625, %v293_v34  ;;  %351 = vadd.xlane.f32.xlu1 %v350_v35  ;;  %v336_v14 = vmul.f32 %v1364_v12, %v1364_v12  ;;  %v337_v16 = vmul.f32 %v1368_v32, %v1368_v32 }
 0x17b   :  { %v1376_v18 = vsub.f32 %v273_v51, %v312_v37  ;;  %v1380_v39 = vsub.f32 %v274_v53, %v312_v37  ;;  %v353_v42 = vadd.f32 %v337_v16, %v336_v14 }
 0x17c   :  { %v296_v44 = vpop.xlane.xlu0 %295 }
 0x17d   :  { %v313_v45 = vmul.f32 0.00390625, %v296_v44  ;;  %354 = vadd.xlane.f32.xlu0 %v353_v42  ;;  %v338_v20 = vmul.f32 %v1376_v18, %v1376_v18  ;;  %v339_v22 = vmul.f32 %v1380_v39, %v1380_v39 }
 0x17f   :  { %v1388_v24 = vsub.f32 %v275_v59, %v313_v45  ;;  %v1392_v47 = vsub.f32 %v276_v61, %v313_v45  ;;  %v356_v49 = vadd.f32 %v339_v22, %v338_v20 }
 0x180   :  { %v299_v51 = vpop.xlane.xlu1 %298 }
 0x181   :  { %v314_v53 = vmul.f32 0.00390625, %v299_v51  ;;  %357 = vadd.xlane.f32.xlu1 %v356_v49  ;;  %v340_v26 = vmul.f32 %v1388_v24, %v1388_v24  ;;  %v341_v29 = vmul.f32 %v1392_v47, %v1392_v47 }
 0x183   :  { %v1400_v30 = vsub.f32 %v277_v3, %v314_v53  ;;  %v1404_v55 = vsub.f32 %v278_v5, %v314_v53  ;;  %v359_v57 = vadd.f32 %v341_v29, %v340_v26 }
 0x184   :  { %v302_v59 = vpop.xlane.xlu0 %301 }
 0x185   :  { %v315_v61 = vmul.f32 0.00390625, %v302_v59  ;;  %360 = vadd.xlane.f32.xlu0 %v359_v57  ;;  %v342_v31 = vmul.f32 %v1400_v30, %v1400_v30  ;;  %v343_v33 = vmul.f32 %v1404_v55, %v1404_v55 }
 0x187   :  { %v1412_v36 = vsub.f32 %v279_v11, %v315_v61  ;;  %v1416_v63 = vsub.f32 %v280_v13, %v315_v61  ;;  %v362_v1 = vadd.f32 %v343_v33, %v342_v31 }
 0x188   :  { %v305_v3 = vpop.xlane.xlu1 %304 }
 0x189   :  { %v316_v5 = vmul.f32 0.00390625, %v305_v3  ;;  %363 = vadd.xlane.f32.xlu1 %v362_v1  ;;  %v344_v38 = vmul.f32 %v1412_v36, %v1412_v36  ;;  %v345_v40 = vmul.f32 %v1416_v63, %v1416_v63 }
 0x18b   :  { %v1424_v41 = vsub.f32 %v281_v19, %v316_v5  ;;  %v1428_v7 = vsub.f32 %v282_v21, %v316_v5  ;;  %v365_v9 = vadd.f32 %v345_v40, %v344_v38 }
 0x18c   :  { %v308_v11 = vpop.xlane.xlu0 %307 }
 0x18d   :  { %v317_v13 = vmul.f32 0.00390625, %v308_v11  ;;  %366 = vadd.xlane.f32.xlu0 %v365_v9  ;;  %v346_v43 = vmul.f32 %v1424_v41, %v1424_v41  ;;  %v347_v46 = vmul.f32 %v1428_v7, %v1428_v7 }
 0x18f   :  { %v1436_v60 = vsub.f32 %v283_v27, %v317_v13  ;;  %v1440_v15 = vsub.f32 %v284_v28, %v317_v13  ;;  %v368_v17 = vadd.f32 %v347_v46, %v346_v43  ;;  %v81_v27 = vld [vmem:[#allocation2] sm:$0x1]  ;;  %v1452_v28 = vpop.permute.xlu1 %487 }
 0x191   :  { %369 = vadd.xlane.f32.xlu1 %v368_v17  ;;  %v348_v19 = vmul.f32 %v1436_v60, %v1436_v60  ;;  %v349_v21 = vmul.f32 %v1440_v15, %v1440_v15 }
 0x193   :  { %v371_v62 = vadd.f32 %v349_v21, %v348_v19  ;;  %v1456_v6 = vpop.permute.xlu1 %441 }
 0x194   :  { %v1454_v4 = vpop.permute.xlu0 %482 }
 0x195   :  { %372 = vadd.xlane.f32.xlu0 %v371_v62 }
 0x197   :  { %v1460_v10 = vpop.permute.xlu1 %497 }
 0x198   :  { %v1458_v8 = vpop.permute.xlu0 %436 }
 0x19b   :  { %v1464_v34 = vpop.permute.xlu1 %451 }
 0x19c   :  { %v1462_v35 = vpop.permute.xlu0 %492 }
 0x1a0   :  { %v1466_v37 = vpop.permute.xlu0 %446 }
 0x1a2   :  { %507 = vperm.xlu1 %1004, %v79_v23  }
 0x1ab   :  { %502 = vperm.xlu0 %1003, %v78_v25  }
 0x1af   :  { %528 = vperm.xlu0 %1003, %v81_v27  }
 0x206   :  { %v352_v14 = vpop.xlane.xlu1 %351 }
 0x207   :  { %v374_v16 = vmul.f32 0.00390625, %v352_v14 }
 0x209   :  { %v382_v42 = vadd.f32 1e-05, %v374_v16 }
 0x20a   :  { %v355_v44 = vpop.xlane.xlu0 %354 }
 0x20b   :  { %1053 = vrsqrt.f32 %v382_v42  ;;  %v375_v45 = vmul.f32 0.00390625, %v355_v44 }
 0x20d   :  { %v383_v20 = vadd.f32 1e-05, %v375_v45 }
 0x20e   :  { %v358_v22 = vpop.xlane.xlu1 %357 }
 0x20f   :  { %1055 = vrsqrt.f32 %v383_v20  ;;  %v376_v49 = vmul.f32 0.00390625, %v358_v22 }
 0x211   :  { %v384_v51 = vadd.f32 1e-05, %v376_v49 }
 0x212   :  { %v361_v53 = vpop.xlane.xlu0 %360 }
 0x213   :  { %1057 = vrsqrt.f32 %v384_v51  ;;  %v377_v26 = vmul.f32 0.00390625, %v361_v53 }
 0x215   :  { %v1054_v29 = vpop.eup %1053  ;;  %v385_v57 = vadd.f32 1e-05, %v377_v26 }
 0x216   :  { %v398_v59 = vmul.f32 %v1054_v29, %v1352_v0  ;;  %v364_v61 = vpop.xlane.xlu1 %363  ;;  %v399_v31 = vmul.f32 %v1054_v29, %v1356_v2 }
 0x217   :  { %1059 = vrsqrt.f32 %v385_v57  ;;  %v378_v33 = vmul.f32 0.00390625, %v364_v61 }
 0x218   :  { %v455_v5 = vmul.f32 %v1338_v48, %v399_v31  ;;  %v454_v38 = vmul.f32 %v1338_v48, %v398_v59 }
 0x219   :  { %v1056_v1 = vpop.eup %1055  ;;  %v386_v3 = vadd.f32 1e-05, %v378_v33 }
 0x21a   :  { %v400_v40 = vmul.f32 %v1056_v1, %v1364_v12  ;;  %v367_v9 = vpop.xlane.xlu0 %366  ;;  %v401_v11 = vmul.f32 %v1056_v1, %v1368_v32  ;;  %v511_v17 = vadd.f32 %v1340_v50, %v455_v5  ;;  %v510_v19 = vadd.f32 %v1340_v50, %v454_v38 }
 0x21b   :  { %1061 = vrsqrt.f32 %v386_v3  ;;  %v379_v13 = vmul.f32 0.00390625, %v367_v9 }
 0x21c   :  { %v457_v0 = vmul.f32 %v1342_v52, %v401_v11  ;;  %v456_v43 = vmul.f32 %v1342_v52, %v400_v40 }
 0x21d   :  { %v1058_v2 = vpop.eup %1057  ;;  %v387_v46 = vadd.f32 1e-05, %v379_v13 }
 0x21e   :  { %v402_v21 = vmul.f32 %v1058_v2, %v1376_v18  ;;  %v370_v48 = vpop.xlane.xlu1 %369  ;;  %v513_v12 = vadd.f32 %v1344_v54, %v457_v0  ;;  %v512_v62 = vadd.f32 %v1344_v54, %v456_v43  ;;  %v403_v32 = vmul.f32 %v1058_v2, %v1380_v39 }
 0x21f   :  { %1063 = vrsqrt.f32 %v387_v46  ;;  %v380_v23 = vmul.f32 0.00390625, %v370_v48 }
 0x220   :  { %v983_v25 = vpack.c.bf16 %v513_v12, %v511_v17  ;;  %v985_v27 = vpack.c.bf16 %v512_v62, %v510_v19  ;;  %v459_v16 = vmul.f32 %v1346_v56, %v403_v32  ;;  %v458_v42 = vmul.f32 %v1346_v56, %v402_v21 }
 0x221   :  { %v1060_v52 = vpop.eup %1059  ;;  %v388_v14 = vadd.f32 1e-05, %v380_v23 }
 0x222   :  { %v404_v50 = vmul.f32 %v1060_v52, %v1388_v24  ;;  %984 = vmatprep.subr.bf16.mxu1 %v983_v25  ;;  %v373_v18 = vpop.xlane.xlu0 %372  ;;  %v405_v44 = vmul.f32 %v1060_v52, %v1392_v47  ;;  %v515_v49 = vadd.f32 %v1454_v4, %v459_v16  ;;  %v514_v51 = vadd.f32 %v1454_v4, %v458_v42 }
 0x223   :  { %1065 = vrsqrt.f32 %v388_v14  ;;  %v381_v54 = vmul.f32 0.00390625, %v373_v18  ;;  %986 = vmatpush1.bf16.msra.mxu1 %v985_v27  ;;  %v1005_v18 = vld [vmem:[%s1649_s9 + $0x4] ss:$8 sps:$4 sm:$0xff]  }
 0x224   :  { %v461_v39 = vmul.f32 %v1348_v58, %v405_v44  ;;  %v460_v45 = vmul.f32 %v1348_v58, %v404_v50  ;;  %v18_v50 = vstv %s1648_s7  ;;  %v1007_v44 = vld [vmem:[%s1649_s9] ss:$8 sps:$4 sm:$0xff]   ;;  %860 = vmatprep.subr.bf16.mxu0 %v1005_v18  ;;  %v1074_v18 = vmov 1966171168  }
 0x225   :  { %v1062_v20 = vpop.eup %1061  ;;  %v389_v22 = vadd.f32 1e-05, %v381_v54  ;;  %19 = vst [vmem:[#allocation3] sm:$0x1] %v18_v50  ;;  %v1008_v54 = vld [vmem:[%s1649_s9 + $0x14] ss:$8 sps:$4 sm:$0xff]   ;;  %861 = vmatpush1.bf16.msra.mxu0 %v1007_v44  ;;  %v911_v44 = vunpack.c.l.s4 %v1074_v18 }
 0x226   :  { %v406_v56 = vmul.f32 %v1062_v20, %v1400_v30  ;;  %v517_v24 = vadd.f32 %v1452_v28, %v461_v39  ;;  %v516_v53 = vadd.f32 %v1452_v28, %v460_v45  ;;  %v407_v47 = vmul.f32 %v1062_v20, %v1404_v55  ;;  %v1010_v39 = vld [vmem:[%s1649_s9 + $0x10] ss:$8 sps:$4 sm:$0xff]   ;;  %862 = vmatprep.subr.bf16.mxu0 %v1008_v54  ;;  %v1011_v45 = vld [vmem:[%s1649_s9 + $0x24] ss:$8 sps:$4 sm:$0xff]   ;;  %v1013_v20 = vld [vmem:[%s1649_s9 + $0x20] ss:$8 sps:$4 sm:$0xff]  }
 0x227   :  { %1067 = vrsqrt.f32 %v389_v22  ;;  %v1014_v22 = vld [vmem:[%s1649_s9 + $0x34] ss:$8 sps:$4 sm:$0xff]  }
 0x228   :  { %v987_v26 = vpack.c.bf16 %v517_v24, %v515_v49  ;;  %v989_v29 = vpack.c.bf16 %v516_v53, %v514_v51  ;;  %v463_v58 = vmul.f32 %v1458_v8, %v407_v47  ;;  %v462_v59 = vmul.f32 %v1458_v8, %v406_v56  ;;  %v1016_v49 = vld [vmem:[%s1649_s9 + $0x30] ss:$8 sps:$4 sm:$0xff]   ;;  %v1017_v51 = vld [vmem:[%s1649_s9 + $0x44] ss:$8 sps:$4 sm:$0xff]   ;;  %v1019_v56 = vld [vmem:[%s1649_s9 + $0x40] ss:$8 sps:$4 sm:$0xff]  }
 0x229   :  { %v1064_v57 = vpop.eup %1063  ;;  %863 = vmatpush1.bf16.msra.mxu0 %v1010_v39  ;;  %v1020_v24 = vld [vmem:[%s1649_s9 + $0x54] ss:$8 sps:$4 sm:$0xff]   ;;  %v1022_v53 = vld [vmem:[%s1649_s9 + $0x50] ss:$8 sps:$4 sm:$0xff]   ;;  %v1023_v47 = vld [vmem:[%s1649_s9 + $0x64] ss:$8 sps:$4 sm:$0xff]  }
 0x22a   :  { %v408_v61 = vmul.f32 %v1064_v57, %v1412_v36  ;;  %988 = vmatprep.subr.bf16.mxu1 %v987_v26  ;;  %v409_v4 = vmul.f32 %v1064_v57, %v1416_v63  ;;  %v519_v55 = vadd.f32 %v1462_v35, %v463_v58  ;;  %v518_v33 = vadd.f32 %v1462_v35, %v462_v59  ;;  %v508_v35 = vpop.permute.xlu1 %507  ;;  %v503_v13 = vpop.permute.xlu0 %502  ;;  %v1025_v26 = vld [vmem:[%s1649_s9 + $0x60] ss:$8 sps:$4 sm:$0xff]   ;;  %v1028_v57 = vld [vmem:[%s1649_s9 + $0x70] ss:$8 sps:$4 sm:$0xff]   ;;  %v1029_v58 = vld [vmem:[%s1649_s9 + $0x84] ss:$8 sps:$4 sm:$0xff]  }
 0x22b   :  { %990 = vmatpush1.bf16.msra.mxu1 %v989_v29  ;;  %864 = vmatprep.subr.bf16.mxu0 %v1011_v45  ;;  %v1026_v29 = vld [vmem:[%s1649_s9 + $0x74] ss:$8 sps:$4 sm:$0xff]   ;;  %v1031_v59 = vld [vmem:[%s1649_s9 + $0x80] ss:$8 sps:$4 sm:$0xff]  }
 0x22c   :  { %v465_v30 = vmul.f32 %v1456_v6, %v409_v4  ;;  %v464_v28 = vmul.f32 %v1456_v6, %v408_v61  ;;  %v1032_v61 = vld [vmem:[%s1649_s9 + $0x94] ss:$8 sps:$4 sm:$0xff]   ;;  %v1034_v4 = vld [vmem:[%s1649_s9 + $0x90] ss:$8 sps:$4 sm:$0xff]  }
 0x22d   :  { %v1066_v31 = vpop.eup %1065  ;;  %865 = vmatpush1.bf16.msra.mxu0 %v1013_v20 }
 0x22e   :  { %v410_v1 = vmul.f32 %v1066_v31, %v1424_v41  ;;  %v411_v3 = vmul.f32 %v1066_v31, %v1428_v7  ;;  %v521_v8 = vadd.f32 %v1460_v10, %v465_v30  ;;  %v520_v36 = vadd.f32 %v1460_v10, %v464_v28  ;;  %v529_v21 = vpop.permute.xlu0 %528  ;;  %866 = vmatprep.subr.bf16.mxu0 %v1014_v22 }
 0x22f   :  { %v912_v22 = vunpack.c.0.s8 %v911_v44 }
 0x230   :  { %v991_v5 = vpack.c.bf16 %v521_v8, %v519_v55  ;;  %v993_v63 = vpack.c.bf16 %v520_v36, %v518_v33  ;;  %v466_v9 = vmul.f32 %v1466_v37, %v410_v1  ;;  %v467_v11 = vmul.f32 %v1466_v37, %v411_v3 }
 0x231   :  { %v1068_v38 = vpop.eup %1067  ;;  %v531_v37 = vlaneseq  ;;  %867 = vmatpush1.bf16.msra.mxu0 %v1016_v49 }
 0x232   :  { %v412_v40 = vmul.f32 %v1068_v38, %v1436_v60  ;;  %v413_v6 = vmul.f32 %v1068_v38, %v1440_v15  ;;  %992 = vmatprep.subr.bf16.mxu1 %v991_v5  ;;  %v522_v43 = vadd.f32 %v503_v13, %v466_v9  ;;  %v523_v2 = vadd.f32 %v503_v13, %v467_v11  ;;  %v80_v15 = vld [vmem:[%s1646_s5] sm:$0x1]  ;;  %v1035_v5 = vld [vmem:[%s1649_s9 + $0xa4] ss:$8 sps:$4 sm:$0xff]   ;;  %v1038_v38 = vld [vmem:[%s1649_s9 + $0xb4] ss:$8 sps:$4 sm:$0xff]  }
 0x233   :  { %994 = vmatpush1.bf16.msra.mxu1 %v993_v63  ;;  %v1519_v17 = vshrl.u32 %v531_v37, 7  ;;  %868 = vmatprep.subr.bf16.mxu0 %v1017_v51  ;;  %v1037_v63 = vld [vmem:[%s1649_s9 + $0xa0] ss:$8 sps:$4 sm:$0xff]   ;;  %v1041_v9 = vld [vmem:[%s1649_s9 + $0xc4] ss:$8 sps:$4 sm:$0xff]   ;;  %vm927_vm7 = vcmp.lt.s32.totalorder %v531_v37, 256 }
 0x234   :  { %v468_v41 = vmul.f32 %v1464_v34, %v412_v40  ;;  %v469_v7 = vmul.f32 %v1464_v34, %v413_v6  ;;  %v20_v34 = vstv %s1647_s8  ;;  %v1040_v40 = vld [vmem:[%s1649_s9 + $0xb0] ss:$8 sps:$4 sm:$0xff]   ;;  %v82_v6 = vld [vmem:[#allocation3] sm:$0x1] }
 0x235   :  { %21 = vst [vmem:[#allocation4] sm:$0x1] %v20_v34  ;;  %v1522_v19 = vsub.s32 0, %v1519_v17  ;;  %869 = vmatpush1.bf16.msra.mxu0 %v1019_v56  ;;  %v1043_v11 = vld [vmem:[%s1649_s9 + $0xc0] ss:$8 sps:$4 sm:$0xff]  }
 0x236   :  { %v524_v10 = vadd.f32 %v508_v35, %v468_v41  ;;  %v525_v0 = vadd.f32 %v508_v35, %v469_v7  ;;  %870 = vmatprep.subr.bf16.mxu0 %v1020_v24  ;;  %v1044_v41 = vld [vmem:[%s1649_s9 + $0xd4] ss:$8 sps:$4 sm:$0xff]   ;;  %v1046_v7 = vld [vmem:[%s1649_s9 + $0xd0] ss:$8 sps:$4 sm:$0xff]   ;;  %v1047_v35 = vld [vmem:[%s1649_s9 + $0xe4] ss:$8 sps:$4 sm:$0xff]  }
 0x237   :  { %v534_v48 = vrot.slane %v529_v21, %v1522_v19  ;;  %v1049_v13 = vld [vmem:[%s1649_s9 + $0xe0] ss:$8 sps:$4 sm:$0xff]  }
 0x238   :  { %v995_v46 = vpack.c.bf16 %v525_v0, %v523_v2  ;;  %v997_v60 = vpack.c.bf16 %v524_v10, %v522_v43  ;;  %v1050_v10 = vld [vmem:[%s1649_s9 + $0xf4] ss:$8 sps:$4 sm:$0xff]   ;;  %v1052_v0 = vld [vmem:[%s1649_s9 + $0xf0] ss:$8 sps:$4 sm:$0xff]  }
 0x239   :  { %871 = vmatpush1.bf16.msra.mxu0 %v1022_v53 }
 0x23a   :  { %996 = vmatprep.subr.bf16.mxu1 %v995_v46  ;;  %872 = vmatprep.subr.bf16.mxu0 %v1023_v47 }
 0x23b   :  { %998 = vmatpush1.bf16.msra.mxu1 %v997_v60 }
 0x23c   :  { %v83_v42 = vld [vmem:[#allocation4] sm:$0x1] }
 0x23d   :  { %873 = vmatpush1.bf16.msra.mxu0 %v1025_v26  ;;  %v915_v26 = vsub.s32 %v912_v22, %v1519_v17 }
 0x23e   :  { %944 = vmatmul.mubr.msk.f32.vlgmr.msra.gmra.mrb[16].mxu1 %vm535_vm4, %v80_v15  ;;  %874 = vmatprep.subr.bf16.mxu0 %v1026_v29 }
 0x241   :  { %875 = vmatpush1.bf16.msra.mxu0 %v1028_v57 }
 0x242   :  { %876 = vmatprep.subr.bf16.mxu0 %v1029_v58 }
 0x245   :  { %877 = vmatpush1.bf16.msra.mxu0 %v1031_v59 }
 0x246   :  { %878 = vmatprep.subr.bf16.mxu0 %v1032_v61 }
 0x249   :  { %879 = vmatpush1.bf16.msra.mxu0 %v1034_v4 }
 0x24a   :  { %880 = vmatprep.subr.bf16.mxu0 %v1035_v5 }
 0x24d   :  { %881 = vmatpush1.bf16.msra.mxu0 %v1037_v63 }
 0x24e   :  { %882 = vmatprep.subr.bf16.mxu0 %v1038_v38 }
 0x251   :  { %883 = vmatpush1.bf16.msra.mxu0 %v1040_v40 }
 0x252   :  { %884 = vmatprep.subr.bf16.mxu0 %v1041_v9 }
 0x255   :  { %885 = vmatpush1.bf16.msra.mxu0 %v1043_v11 }
 0x256   :  { %886 = vmatprep.subr.bf16.mxu0 %v1044_v41 }
 0x259   :  { %887 = vmatpush1.bf16.msra.mxu0 %v1046_v7 }
 0x25a   :  { %888 = vmatprep.subr.bf16.mxu0 %v1047_v35 }
 0x25d   :  { %889 = vmatpush1.bf16.msra.mxu0 %v1049_v13 }
 0x25e   :  { %890 = vmatprep.subr.bf16.mxu0 %v1050_v10 }
 0x261   :  { %891 = vmatpush1.bf16.msra.mxu0 %v1052_v0 }
 0x311   :  { %v605_v12 = vpop.f32.mrb[16].mxu1 }
 0x312   :  { %v606_v62 = vadd.f32 %v605_v12, %v534_v48  ;;  %v607_v32 = vpop.f32.mrb[17].mxu1 }
 0x313   :  { %v608_v23 = vadd.f32 %v607_v32, %v534_v48 }
 0x314   :  { %v610_v25 = vmax.f32 %v606_v62, 0.0 }
 0x315   :  { %v611_v27 = vmax.f32 %v608_v23, 0.0 }
 0x316   :  { %v612_v52 = vsel %vm149_vm0, %v610_v25, 0.0 }
 0x317   :  { %v613_v14 = vsel %vm149_vm0, %v611_v27, 0.0 }
 0x318   :  { %v614_v16 = vadd.f32 %v613_v14, %v612_v52 }
 0x31a   :  { %615 = vadd.xlane.f32.xlu1 %v614_v16  ;;  %v688_v16 = vld [vmem:[%s1650_s10] sm:$0x3] }
 0x31b   :  { %v853_v50 = vrot.slane %v688_v16, %v1522_v19 }
 0x32b   :  { %645 = vperm.xlu1 %1004, %v83_v42   ;;  %v856_v42 = vsub.s32 1, %v1519_v17 }
 0x32d   :  { %v857_v54 = vrot.slane %v688_v16, %v856_v42 }
 0x3a7   :  { %v616_v30 = vpop.xlane.xlu1 %615 }
 0x3a8   :  { %v617_v28 = vmul.f32 0.00390625, %v616_v30 }
 0x3aa   :  { %v618_v31 = vsub.f32 %v610_v25, %v617_v28  ;;  %v619_v55 = vsub.f32 %v611_v27, %v617_v28 }
 0x3ab   :  { %v646_v34 = vpop.permute.xlu1 %645 }
 0x3ac   :  { %v620_v33 = vmul.f32 %v618_v31, %v618_v31  ;;  %v621_v1 = vmul.f32 %v619_v55, %v619_v55  ;;  %v651_v62 = vrot.slane %v646_v34, %v1522_v19 }
 0x3ae   :  { %v622_v3 = vsel %vm149_vm0, %v620_v33, 0.0  ;;  %v623_v8 = vsel %vm149_vm0, %v621_v1, 0.0 }
 0x3af   :  { %v624_v36 = vadd.f32 %v623_v8, %v622_v3 }
 0x3b1   :  { %625 = vadd.xlane.f32.xlu0 %v624_v36 }
 0x3c7   :  { %634 = vperm.xlu0 %1003, %v82_v6  }
 0x43e   :  { %v626_v43 = vpop.xlane.xlu0 %625 }
 0x43f   :  { %v627_v2 = vmul.f32 0.00390625, %v626_v43 }
 0x441   :  { %v628_v46 = vadd.f32 1e-05, %v627_v2 }
 0x443   :  { %1069 = vrsqrt.f32 %v628_v46 }
 0x446   :  { %v635_v60 = vpop.permute.xlu0 %634 }
 0x447   :  { %v640_v48 = vrot.slane %v635_v60, %v1522_v19 }
 0x44d   :  { %v1070_v15 = vpop.eup %1069 }
 0x44e   :  { %v630_v21 = vmul.f32 %v1070_v15, %v618_v31  ;;  %v631_v12 = vmul.f32 %v1070_v15, %v619_v55 }
 0x450   :  { %v641_v32 = vmul.f32 %v640_v48, %v630_v21  ;;  %v642_v23 = vmul.f32 %v640_v48, %v631_v12 }
 0x452   :  { %v653_v25 = vadd.f32 %v651_v62, %v642_v23  ;;  %v652_v27 = vadd.f32 %v651_v62, %v641_v32 }
 0x454   :  { %v655_v52 = vpack.c.bf16 %v653_v25, %v653_v25  ;;  %v654_v14 = vpack.c.bf16 %v652_v27, %v652_v27 }
 0x456   :  { %892 = vmatprep.mubr.bf16.mxu0 %v655_v52 }
 0x457   :  { %893 = vmatmul.mubr.bf16.vlgmr.msra.gmra.mrb[0].mxu0 %v654_v14 }
 0x52a   :  { %v894_v39 = vpop.f32.mrb[0].mxu0 }
 0x52b   :  { %v895_v45 = vadd.f32 %v894_v39, %v853_v50  ;;  %v896_v20 = vpop.f32.mrb[1].mxu0 }
 0x52c   :  { %v897_v49 = vadd.f32 %v896_v20, %v857_v54  ;;  %v898_v51 = vpop.f32.mrb[2].mxu0 }
 0x52d   :  { %vm901_vm5 = vcmp.gt.f32.partialorder %v895_v45, 0.0  ;;  %v903_v56 = vmul.f32 0.01, %v895_v45  ;;  %v899_v24 = vpop.f32.mrb[3].mxu0 }
 0x52e   :  { %vm902_vm6 = vcmp.gt.f32.partialorder %v897_v49, 0.0  ;;  %v904_v53 = vmul.f32 0.01, %v897_v49 }
 0x52f   :  { %v905_v47 = vsel %vm901_vm5, %v895_v45, %v903_v56 }
 0x530   :  { %v906_v29 = vsel %vm902_vm6, %v897_v49, %v904_v53 }
 0x531   :  { %v909_v57 = vcombine.low %v905_v47, %v906_v29 }
 0x533   :  { %v916_v19 = vrot.slane %v909_v57, %v915_v26 }
 0x535   :  { %v923_v58 = vrot.slane %v916_v19, %v915_v26 }
 0x537   :  { %929 = vst.msk [vmem:[%s1651_s11] sm:$0x3] %vm927_vm7, %v923_v58 }

</bundles_post_ra>
